<compile_context>
chip_gen: v6e
topology: v6e:2x2x1
jax: 0.10.0
libtpu: 0.0.40
codegen_flags: <defaults>
</compile_context>

<pallas_src>
import jax
import jax.numpy as jnp
from jax.experimental import pallas as pl
from jax.experimental.pallas import tpu as pltpu

LANE = 128
SUBLANE = 8


def _round_up(v, m):
    return ((v + m - 1) // m) * m


def _linear_kernel(x_ref, w_ref, b_ref, o_ref, acc_ref):
    """Partial (TM x TK) @ (TK x NCpad); bias-add + store on the last K step."""
    k = pl.program_id(1)

    @pl.when(k == 0)
    def _():
        acc_ref[...] = jnp.zeros_like(acc_ref)

    acc_ref[...] += jnp.dot(
        x_ref[...], w_ref[...], preferred_element_type=jnp.float32
    )

    @pl.when(k == pl.num_programs(1) - 1)
    def _():
        o_ref[...] = (acc_ref[...] + b_ref[...]).astype(o_ref.dtype)


def classifier_forward(x, adj, weight, bias, *, tm=None, tk=None):
    """Pallas implementation of Classifier.forward(x, adj) == x @ W^T + b.

    x      : [N, nhid]
    adj    : unused (API parity with the PyTorch module)
    weight : [nclass, nhid]  (PyTorch nn.Linear layout)
    bias   : [nclass]
    """
    del adj  # forward() ignores adj in the reference module
    n, nhid = x.shape
    nclass = weight.shape[0]

    # ---- tile sizing (multiples of 8 rows; K tiles of <=512; lane-dense N_out)
    if tm is None:
        tm = min(512, max(SUBLANE, _round_up(n, SUBLANE)))
    if tk is None:
        tk = nhid if nhid <= 512 else 512

    n_pad = _round_up(n, tm)
    k_pad = _round_up(nhid, tk)
    nc_pad = max(LANE, _round_up(nclass, LANE))

    # ---- zero-pad operands (zero rows/cols contribute nothing to the matmul)
    def pad2(a, rows, cols):
        r, c = a.shape
        if r == rows and c == cols:
            return a
        return jnp.pad(a, ((0, rows - r), (0, cols - c)))

    x_p = pad2(x, n_pad, k_pad)                         # [n_pad, k_pad]
    w_t = pad2(weight.T, k_pad, nc_pad)                 # [k_pad, nc_pad]
    b_p = pad2(bias.reshape(1, nclass), 1, nc_pad)      # [1, nc_pad]

    grid = (n_pad // tm, k_pad // tk)

    cost = pl.CostEstimate(
        flops=2 * n * nhid * nclass,
        transcendentals=0,
        bytes_accessed=4 * (n * nhid + nhid * nclass + n * nclass),
    )

    out = pl.pallas_call(
        _linear_kernel,
        out_shape=jax.ShapeDtypeStruct((n_pad, nc_pad), x.dtype),
        grid=grid,
        in_specs=[
            pl.BlockSpec((tm, tk), lambda i, k: (i, k)),        # x row/K tile
            pl.BlockSpec((tk, nc_pad), lambda i, k: (k, 0)),    # weight K tile
            pl.BlockSpec((1, nc_pad), lambda i, k: (0, 0)),     # bias, resident
        ],
        out_specs=pl.BlockSpec((tm, nc_pad), lambda i, k: (i, 0)),
        scratch_shapes=[pltpu.VMEM((tm, nc_pad), jnp.float32)],
        compiler_params=pltpu.CompilerParams(
            dimension_semantics=("parallel", "arbitrary"),
        ),
        cost_estimate=cost,
    )(x_p, w_t, b_p)

    # Slice away the N / nclass padding outside the kernel.
    return out[:n, :nclass]


def init_classifier_params(key, nhid, nclass):
    """Param init mirroring the PyTorch module.

    weight: normal(std=0.05)  (reset_parameters)
    bias:   uniform(-1/sqrt(nhid), 1/sqrt(nhid))  (nn.Linear default)
    """
    kw, kb = jax.random.split(key)
    weight = 0.05 * jax.random.normal(kw, (nclass, nhid), dtype=jnp.float32)
    bound = 1.0 / (nhid ** 0.5)
    bias = jax.random.uniform(
        kb, (nclass,), minval=-bound, maxval=bound, dtype=jnp.float32
    )
    return weight, bias


if __name__ == "__main__":
    key = jax.random.PRNGKey(0)
    k_x, k_adj, k_p = jax.random.split(key, 3)

    # Small shapes implied by the forward: x is [N, nhid]; adj is [N, N].
    N, NEMBED, NHID, NCLASS = 8, 16, 32, 8
    x = jax.random.normal(k_x, (N, NHID), dtype=jnp.float32)
    adj = jax.random.normal(k_adj, (N, N), dtype=jnp.float32)

    weight, bias = init_classifier_params(k_p, NHID, NCLASS)

    out = classifier_forward(x, adj, weight, bias)
    out = jax.block_until_ready(out)

    # Reference check in plain JAX (same math as torch Linear).
    ref = x @ weight.T + bias
    assert out.shape == (N, NCLASS)
    assert jnp.allclose(out, ref, atol=1e-5, rtol=1e-5)

    # Also exercise a larger, non-trivially-tiled shape to validate N/K tiling.
    k2x, k2p = jax.random.split(jax.random.PRNGKey(1))
    N2, NHID2, NCLASS2 = 300, 640, 10
    x2 = jax.random.normal(k2x, (N2, NHID2), dtype=jnp.float32)
    w2, b2 = init_classifier_params(k2p, NHID2, NCLASS2)
    out2 = jax.block_until_ready(
        classifier_forward(x2, adj, w2, b2, tm=128, tk=128)
    )
    ref2 = x2 @ w2.T + b2
    assert out2.shape == (N2, NCLASS2)
    assert jnp.allclose(out2, ref2, atol=1e-4, rtol=1e-4)

    print("KERNEL_OK")
</pallas_src>

<mosaic_0001>
module attributes {stable_mosaic.version = 11 : i64} {
  func.func @_linear_kernel(%arg0: i32, %arg1: i32, %arg2: memref<8x32xf32, #tpu.memory_space<vmem>>, %arg3: memref<32x128xf32, #tpu.memory_space<vmem>>, %arg4: memref<1x128xf32, #tpu.memory_space<vmem>>, %arg5: memref<8x128xf32, #tpu.memory_space<vmem>>, %arg6: memref<8x128xf32, #tpu.memory_space<vmem>>) attributes {dimension_semantics = [#tpu.dimension_semantics<parallel>, #tpu.dimension_semantics<arbitrary>], iteration_bounds = array<i64: 1, 1>, scalar_prefetch = 0 : i64, scratch_operands = 1 : i64, tpu.core_type = #tpu.core_type<tc>, window_params = [{transform_indices = @transform_0, window_bounds = array<i64: 8, 32>}, {transform_indices = @transform_1, window_bounds = array<i64: 32, 128>}, {pipeline_mode = #tpu.pipeline_mode<synchronous>, transform_indices = @transform_2, window_bounds = array<i64: 1, 128>}, {transform_indices = @transform_3, window_bounds = array<i64: 8, 128>}]} {
    %c0_i32 = arith.constant 0 : i32
    %0 = arith.cmpi eq, %arg1, %c0_i32 : i32
    %1 = arith.extui %0 : i1 to i32
    %c0_i32_0 = arith.constant 0 : i32
    %2 = arith.cmpi ne, %1, %c0_i32_0 : i32
    scf.if %2 {
      %cst_10 = arith.constant 0.000000e+00 : f32
      %12 = vector.broadcast %cst_10 : f32 to vector<8x128xf32>
      %c0_11 = arith.constant 0 : index
      %c0_12 = arith.constant 0 : index
      %13 = vector.load %arg6[%c0_11, %c0_12] : memref<8x128xf32, #tpu.memory_space<vmem>>, vector<8x128xf32>
      tpu.vector_store %arg6[%c0_11, %c0_12], %12 {strides = array<i32>} : memref<8x128xf32, #tpu.memory_space<vmem>>, vector<8x128xf32>,
    } else {
    }
    %c0 = arith.constant 0 : index
    %c0_1 = arith.constant 0 : index
    %3 = vector.load %arg6[%c0, %c0_1] : memref<8x128xf32, #tpu.memory_space<vmem>>, vector<8x128xf32>
    %c0_2 = arith.constant 0 : index
    %c0_3 = arith.constant 0 : index
    %4 = vector.load %arg2[%c0_2, %c0_3] : memref<8x32xf32, #tpu.memory_space<vmem>>, vector<8x32xf32>
    %c0_4 = arith.constant 0 : index
    %c0_5 = arith.constant 0 : index
    %5 = vector.load %arg3[%c0_4, %c0_5] : memref<32x128xf32, #tpu.memory_space<vmem>>, vector<32x128xf32>
    %cst = arith.constant dense<0.000000e+00> : vector<8x128xf32>
    %6 = tpu.matmul %4, %5, %cst {dimension_numbers = #tpu.dot_dimension_numbers<[1], [0], [0], [1], [0, 0, 1, 1], [], []>} : vector<8x32xf32>, vector<32x128xf32>, vector<8x128xf32> -> vector<8x128xf32>
    %7 = arith.addf %3, %6 : vector<8x128xf32>
    %c0_6 = arith.constant 0 : index
    %c0_7 = arith.constant 0 : index
    %8 = vector.load %arg6[%c0_6, %c0_7] : memref<8x128xf32, #tpu.memory_space<vmem>>, vector<8x128xf32>
    tpu.vector_store %arg6[%c0_6, %c0_7], %7 {strides = array<i32>} : memref<8x128xf32, #tpu.memory_space<vmem>>, vector<8x128xf32>,
    %c0_i32_8 = arith.constant 0 : i32
    %9 = arith.cmpi eq, %arg1, %c0_i32_8 : i32
    %10 = arith.extui %9 : i1 to i32
    %c0_i32_9 = arith.constant 0 : i32
    %11 = arith.cmpi ne, %10, %c0_i32_9 : i32
    scf.if %11 {
      %c0_10 = arith.constant 0 : index
      %c0_11 = arith.constant 0 : index
      %12 = vector.load %arg6[%c0_10, %c0_11] : memref<8x128xf32, #tpu.memory_space<vmem>>, vector<8x128xf32>
      %c0_12 = arith.constant 0 : index
      %c0_13 = arith.constant 0 : index
      %13 = vector.load %arg4[%c0_12, %c0_13] : memref<1x128xf32, #tpu.memory_space<vmem>>, vector<1x128xf32>
      %14 = vector.broadcast %13 : vector<1x128xf32> to vector<8x128xf32>
      %15 = arith.addf %12, %14 : vector<8x128xf32>
      %c0_14 = arith.constant 0 : index
      %c0_15 = arith.constant 0 : index
      %16 = vector.load %arg5[%c0_14, %c0_15] : memref<8x128xf32, #tpu.memory_space<vmem>>, vector<8x128xf32>
      tpu.vector_store %arg5[%c0_14, %c0_15], %15 {strides = array<i32>} : memref<8x128xf32, #tpu.memory_space<vmem>>, vector<8x128xf32>,
    } else {
    }
    return
  }
  func.func @transform_0(%arg0: i32, %arg1: i32) -> (i32, i32) {
    %c0_i32 = arith.constant 0 : i32
    return %arg0, %arg1 : i32, i32
  }
  func.func @transform_1(%arg0: i32, %arg1: i32) -> (i32, i32) {
    %c0_i32 = arith.constant 0 : i32
    %c0_i32_0 = arith.constant 0 : i32
    return %arg1, %c0_i32 : i32, i32
  }
  func.func @transform_2(%arg0: i32, %arg1: i32) -> (i32, i32) {
    %c0_i32 = arith.constant 0 : i32
    %c0_i32_0 = arith.constant 0 : i32
    %c0_i32_1 = arith.constant 0 : i32
    return %c0_i32, %c0_i32_0 : i32, i32
  }
  func.func @transform_3(%arg0: i32, %arg1: i32) -> (i32, i32) {
    %c0_i32 = arith.constant 0 : i32
    %c0_i32_0 = arith.constant 0 : i32
    return %arg0, %c0_i32 : i32, i32
  }
}

</mosaic_0001>

<bundles_post_ra>
// kernel: tpu_custom_call.1
= control target key start
LH: loop header
LB: loop body
LE: loop exit
PB: predicated region body
PF: predicated region fallthrough
CT: control target
= control target key end

     0   :  { %8 = vsyncpa [#allocation4], 0  ;;  %s287_s0 = inlined_call_operand.hbm [shape: f32[8,32], index: 0, kind: input, shape index: {}]   ;;  %s288_s1 = inlined_call_operand.hbm [shape: f32[32,128], index: 1, kind: input, shape index: {}]   ;;  %s289_s2 = inlined_call_operand.vmem [shape: f32[1,128], index: 2, kind: input, shape index: {}]   ;;  %s290_s3 = inlined_call_operand.hbm [shape: f32[8,128], index: 3, kind: output, shape index: {}]  }
   0x1   :  { %9 = vsyncpa [#allocation7], 0 }
   0x2   :  { %10 = vsyncpa [#allocation5], 0  ;;  %s248_s12 = smov [#allocation3]   ;;  %s249_s14 = smov [#allocation6]  }
   0x3   :  { %s17_s13 = sshll.u32 %s248_s12, 4  ;;  %s26_s15 = sshll.u32 %s249_s14, 4  ;;  %s18_s13 = int_to_ptr.vmem [resolvable:$true] %s17_s13  ;;  %s27_s15 = int_to_ptr.vmem [resolvable:$true] %s26_s15 }
   0x4   :  { %s190_s16 = scalar_lea.vmem %s18_s13, 128  ;;  %p195_p1 = scmp.lt.s32.totalorder %s18_s13, %s18_s13 }
   0x5   :  { %p191_p0 = scmp.ne.s32.totalorder %s18_s13, %s190_s16  ;;  %p196_p2 = scmp.lt.s32.totalorder %s190_s16, %s190_s16 }
   0x7   :  { %p197_p3 = por %p196_p2, %p195_p1 }
   0x9   :  { %p198_p4 = pnand %p197_p3, %p191_p0 }
   0xb   :  { %201 = shalt.err (!%p198_p4)
}
   0xc   :  { %20 = dma.hbm_to_vmem [thread:$0]  %s287_s0, 128, %s18_s13, [#allocation4]  }
   0xd   :  { %s210_s19 = scalar_lea.vmem %s27_s15, 512  ;;  %p215_p6 = scmp.lt.s32.totalorder %s27_s15, %s27_s15 }
   0xe   :  { %p211_p5 = scmp.ne.s32.totalorder %s27_s15, %s210_s19  ;;  %p216_p7 = scmp.lt.s32.totalorder %s210_s19, %s210_s19 }
  0x10   :  { %p217_p8 = por %p216_p7, %p215_p6 }
  0x12   :  { %p218_p9 = pnand %p217_p8, %p211_p5 }
  0x14   :  { %221 = shalt.err (!%p218_p9)
}
  0x15   :  { %s250_s20 = smov 128   ;;  %s251_s21 = smov 8  }
  0x16   :  { %32 = dma.hbm_to_vmem [thread:$0]  %s288_s1, 512, %s27_s15, [#allocation7], %s250_s20, %s250_s20, %s251_s21  }
  0x17   :  { %242 = dma.done.wait [#allocation4], 128  }
  0x18   :  { %243 = vsyncadd [#allocation4], 4294967168 }
  0x19   :  { %244 = dma.done.wait [#allocation7], 512  }
  0x1a   :  { %245 = vsyncadd [#allocation7], 4294966784  ;;  %v252_v0 = vmov 0.0   ;;  %vm253_vm0 = vmmov 0   ;;  %v51_v1 = vld [vmem:[#allocation6 + $0x18] sm:$0xff]  ;;  %v50_v2 = vld [vmem:[#allocation6 + $0x10] sm:$0xff] }
  0x1b   :  { %164 = vmatprep.subr.mxu0 %v252_v0  ;;  %172 = vmatprep.mubr.msk.f32.mxu0 %vm253_vm0, %v252_v0  ;;  %v49_v3 = vld [vmem:[#allocation6 + $0x8] sm:$0xff]  ;;  %v48_v4 = vld [vmem:[#allocation6] sm:$0xff]  ;;  %v47_v5 = vld [vmem:[#allocation3] sm:$0xff]  ;;  %vm52_vm1 = vcmask 261120   ;;  %s254_s24 = smov [#allocation8]  }
  0x1c   :  { %165 = vmatpush3.msra.mxu0 %v51_v1  ;;  %v158_v6 = vld [vmem:[%s289_s2] ss:$0 sm:$0xff]  ;;  %s147_s25 = sshll.u32 %s254_s24, 4  ;;  %s148_s25 = int_to_ptr.vmem [resolvable:$true] %s147_s25 }
  0x1d   :  { %166 = vmatprep.subr.mxu0 %v252_v0  ;;  %s222_s26 = scalar_lea.vmem %s148_s25, 128  ;;  %p227_p11 = scmp.lt.s32.totalorder %s148_s25, %s148_s25 }
  0x1e   :  { %167 = vmatpush3.msra.mxu0 %v50_v2  ;;  %p223_p10 = scmp.ne.s32.totalorder %s148_s25, %s222_s26  ;;  %p228_p12 = scmp.lt.s32.totalorder %s222_s26, %s222_s26 }
  0x1f   :  { %168 = vmatprep.subr.mxu0 %v252_v0 }
  0x20   :  { %169 = vmatpush3.msra.mxu0 %v49_v3  ;;  %p229_p13 = por %p228_p12, %p227_p11 }
  0x21   :  { %170 = vmatprep.subr.mxu0 %v252_v0 }
  0x22   :  { %171 = vmatpush3.msra.mxu0 %v48_v4  ;;  %p230_p0 = pnand %p229_p13, %p223_p10 }
  0x23   :  { %173 = vmatmul.mubr.msk.f32.vlgmr.msra.gmra.mxu0 %vm52_vm1, %v47_v5 }
  0xe3   :  { %v122_v7 = vpop.f32.mrf.mxu0 }
  0xe4   :  { %v139_v8 = vadd.f32 %v158_v6, %v122_v7 }
  0xe5   :  { %v174_v9 = vpop.f32.mrf.mxu0 }
  0xe6   :  { %140 = vst [vmem:[#allocation8] sm:$0xff] %v139_v8 }
  0xe7   :  { %233 = shalt.err (!%p230_p0)
}
  0xe8   :  { %150 = dma.vmem_to_hbm [thread:$0]  %s148_s25, 128, %s290_s3, [#allocation5]  }
  0xe9   :  { %246 = dma.done.wait [#allocation5], 128  }
  0xea   :  { %247 = vsyncadd [#allocation5], 4294967168 }
  0xeb   :  { %154 = vsyncpa [#allocation4], 1 }
  0xec   :  { %155 = vsyncpa [#allocation7], 1 }
  0xed   :  { %156 = vsyncpa [#allocation5], 1 }

</bundles_post_ra>
